<compile_context>
chip_gen: v6e
topology: v6e:2x2x1
jax: 0.10.0
libtpu: 0.0.40
codegen_flags: <defaults>
</compile_context>

<pallas_src>
import functools

import jax
import jax.numpy as jnp
from jax.experimental import pallas as pl
from jax.experimental.pallas import tpu as pltpu


_BLOCK_ROWS = 4096      # 4096 x 128 f32 = 2 MiB per input tile (4 MiB double-buffered)
_LANES = 128
_SUBLANES = 8


def _fused_tile_kernel(x_ref, out_ref, *, split, limit, block_rows):
    """Per-tile partial sum of the fused binary loss.

    x_ref  : (block_rows, 128) block of the combined interleaved flat stream
             [p0_0, p0_1, p1_0, p1_1, ..., n0_0, n0_1, ...] (caller dtype)
    out_ref: (8, 128) f32 vector partial sum for this tile
    split  : flat index where the neg stream starts (= 2 * N_pos), static
    limit  : number of valid flat elements (= 2 * (N_pos + N_neg)), static
    """
    t, l = block_rows, _LANES
    tile_elems = t * l
    base = pl.program_id(0) * tile_elems          # global flat offset of this tile

    x = x_ref[...].astype(jnp.float32)            # (t, 128)
    # Bring each pair's x0 (even lane) next to its x1 (odd lane):
    # y[..., j] = x[..., j-1]  ->  at odd lanes: y = x0, x = x1.
    y = pltpu.roll(x, shift=1, axis=1)
    d0 = y - x                                    # odd lanes: x0 - x1  ("pos" sense)

    lane_row = jax.lax.broadcasted_iota(jnp.int32, (1, l), 1)
    odd = (lane_row & 1) == 1                     # (1, 128) lane-parity mask

    def softplus(d):
        # max(d,0) + log(1 + exp(-|d|)) -- stable; VPU + EUP only, no XLU.
        return jnp.maximum(d, 0.0) + jnp.log(1.0 + jnp.exp(-jnp.abs(d)))

    def reduce_to_slab(contrib):
        # Collapse (t,128) -> (8,128) with pure vreg adds; the cross-lane
        # reduction to a scalar happens once, outside the kernel.
        return contrib.reshape(t // 8, 8, l).sum(axis=0)

    # Tile classification (scalar int math on program_id only).
    uniform = jnp.logical_or(base + tile_elems <= split, base >= split)
    full = base + tile_elems <= limit
    fast = jnp.logical_and(uniform, full)

    @pl.when(fast)
    def _():
        # Interior tile: single sign for the whole tile, no tail masking needed.
        sign = jnp.where(base >= split, -1.0, 1.0)            # pos:+1  neg:-1
        sp = softplus(d0 * sign)
        out_ref[...] = reduce_to_slab(jnp.where(odd, sp, 0.0))

    @pl.when(jnp.logical_not(fast))
    def _():
        # Boundary / tail tile (at most 2 per call): full per-element masking.
        sub = jax.lax.broadcasted_iota(jnp.int32, (t, l), 0)
        lane = jax.lax.broadcasted_iota(jnp.int32, (t, l), 1)
        idx = base + sub * l + lane                           # global flat index
        d = jnp.where(idx < split, d0, -d0)                   # pos vs neg sign
        sp = softplus(d)
        valid = jnp.logical_and(odd, idx < limit)             # odd lanes, real pairs
        out_ref[...] = reduce_to_slab(jnp.where(valid, sp, 0.0))


def binary_loss(pos_score, neg_score, *, block_rows=_BLOCK_ROWS):
    """Pallas implementation of BinaryLoss.forward; returns a scalar float32."""
    n_pos, c_pos = pos_score.shape
    n_neg, c_neg = neg_score.shape
    assert c_pos == 2 and c_neg == 2, "BinaryLoss expects 2-class logits"

    split = 2 * n_pos                       # flat index where neg stream starts
    limit = split + 2 * n_neg               # total number of valid flat elements

    block_rows = max(_SUBLANES, (block_rows // _SUBLANES) * _SUBLANES)
    # Kernel flat-index math is int32.
    assert limit + block_rows * _LANES < 2**31, "input too large for int32 indexing"

    # Keep the caller's dtype through the DMA; cast to f32 inside the kernel.
    dtype = jnp.result_type(pos_score.dtype, neg_score.dtype)
    chunk = _SUBLANES * _LANES
    padded = -(-limit // chunk) * chunk     # align to (8,128) = 1024 flat elements
    parts = [pos_score.reshape(-1).astype(dtype),
             neg_score.reshape(-1).astype(dtype)]
    if padded != limit:
        parts.append(jnp.zeros((padded - limit,), dtype))   # tiny (<1024) tail pad
    flat = jnp.concatenate(parts)           # single shared buffer for pos + neg
    rows_p = padded // _LANES

    # Tile rows: as large as useful, but keep >= 2 tiles whenever possible so the
    # "parallel" grid axis can be split across v7x's two TensorCores.
    half = -(-rows_p // 2)
    half = -(-half // _SUBLANES) * _SUBLANES
    t = max(_SUBLANES, min(block_rows, half))
    grid = pl.cdiv(rows_p, t)

    kernel = functools.partial(_fused_tile_kernel,
                               split=split, limit=limit, block_rows=t)

    partials = pl.pallas_call(
        kernel,
        out_shape=jax.ShapeDtypeStruct((grid * _SUBLANES, _LANES), jnp.float32),
        grid=(grid,),
        in_specs=[pl.BlockSpec((t, _LANES), lambda i: (i, 0))],
        out_specs=pl.BlockSpec((_SUBLANES, _LANES), lambda i: (i, 0)),
        compiler_params=pltpu.CompilerParams(
            dimension_semantics=("parallel",)),
    )(flat.reshape(rows_p, _LANES))

    # Single small final reduction (also improves precision: per-lane partials
    # are only collapsed once).
    return jnp.sum(partials)


def _reference(pos_score, neg_score):
    pos_loss = -jax.nn.log_softmax(pos_score.astype(jnp.float32), axis=1)[:, 1]
    neg_loss = -jax.nn.log_softmax(neg_score.astype(jnp.float32), axis=1)[:, 0]
    return pos_loss.sum() + neg_loss.sum()


if __name__ == "__main__":
    key = jax.random.PRNGKey(0)
    k1, k2, k3, k4, k5, k6 = jax.random.split(key, 6)

    cases = [
        # small: single tile, mixed + ragged tail in one block
        (jax.random.normal(k1, (8, 2), dtype=jnp.float32),
         jax.random.normal(k2, (16, 2), dtype=jnp.float32), {}),
        # ragged tail, pos/neg boundary mid-tile, partial (OOB-masked) last block
        (jax.random.normal(k3, (700, 2), dtype=jnp.float32),
         jax.random.normal(k4, (800, 2), dtype=jnp.float32), {}),
        # tiny tiles force a multi-step grid exercising fast-pos, fast-neg,
        # mixed-boundary and tail code paths
        (jax.random.normal(k5, (600, 2), dtype=jnp.float32),
         jax.random.normal(k6, (1520, 2), dtype=jnp.float32), {"block_rows": 8}),
    ]

    for pos, neg, kw in cases:
        loss = jax.block_until_ready(binary_loss(pos, neg, **kw))
        ref = _reference(pos, neg)
        assert jnp.allclose(loss, ref, rtol=1e-5, atol=1e-5), (loss, ref)

    print("KERNEL_OK")
</pallas_src>

<mosaic_0001>
module attributes {stable_mosaic.version = 11 : i64} {
  func.func @_fused_tile_kernel(%arg0: i32, %arg1: memref<8x128xf32, #tpu.memory_space<vmem>>, %arg2: memref<8x128xf32, #tpu.memory_space<vmem>>) attributes {dimension_semantics = [#tpu.dimension_semantics<parallel>], iteration_bounds = array<i64: 1>, scalar_prefetch = 0 : i64, scratch_operands = 0 : i64, tpu.core_type = #tpu.core_type<tc>, window_params = [{transform_indices = @transform_0, window_bounds = array<i64: 8, 128>}, {transform_indices = @transform_1, window_bounds = array<i64: 8, 128>}]} {
    %c1024_i32 = arith.constant 1024 : i32
    %0 = arith.muli %arg0, %c1024_i32 : i32
    %c0 = arith.constant 0 : index
    %c0_0 = arith.constant 0 : index
    %1 = vector.load %arg1[%c0, %c0_0] : memref<8x128xf32, #tpu.memory_space<vmem>>, vector<8x128xf32>
    %c1_i32 = arith.constant 1 : i32
    %2 = tpu.dynamic_rotate %1 by %c1_i32 dim 1 : vector<8x128xf32>, i32 -> vector<8x128xf32>
    %3 = arith.subf %2, %1 : vector<8x128xf32>
    %4 = tpu.iota {dimensions = array<i32: 1>} : vector<1x128xi32>
    %c1_i32_1 = arith.constant 1 : i32
    %5 = vector.broadcast %c1_i32_1 : i32 to vector<1x128xi32>
    %6 = arith.andi %4, %5 : vector<1x128xi32>
    %c1_i32_2 = arith.constant 1 : i32
    %7 = vector.broadcast %c1_i32_2 : i32 to vector<1x128xi32>
    %8 = arith.cmpi eq, %6, %7 : vector<1x128xi32>
    %c1024_i32_3 = arith.constant 1024 : i32
    %9 = arith.addi %0, %c1024_i32_3 : i32
    %c16_i32 = arith.constant 16 : i32
    %10 = arith.cmpi sle, %9, %c16_i32 : i32
    %c16_i32_4 = arith.constant 16 : i32
    %11 = arith.cmpi sge, %0, %c16_i32_4 : i32
    %12 = arith.ori %10, %11 : i1
    %c1024_i32_5 = arith.constant 1024 : i32
    %13 = arith.addi %0, %c1024_i32_5 : i32
    %c48_i32 = arith.constant 48 : i32
    %14 = arith.cmpi sle, %13, %c48_i32 : i32
    %15 = arith.andi %12, %14 : i1
    %16 = arith.extui %15 : i1 to i32
    %c0_i32 = arith.constant 0 : i32
    %17 = arith.cmpi ne, %16, %c0_i32 : i32
    scf.if %17 {
      %c16_i32_7 = arith.constant 16 : i32
      %21 = arith.cmpi sge, %0, %c16_i32_7 : i32
      %cst = arith.constant -1.000000e+00 : f32
      %cst_8 = arith.constant 1.000000e+00 : f32
      %22 = arith.select %21, %cst, %cst_8 : f32
      %23 = vector.broadcast %22 : f32 to vector<8x128xf32>
      %24 = arith.mulf %3, %23 : vector<8x128xf32>
      %cst_9 = arith.constant 0.000000e+00 : f32
      %25 = vector.broadcast %cst_9 : f32 to vector<8x128xf32>
      %26 = arith.maximumf %24, %25 : vector<8x128xf32>
      %27 = math.absf %24 : vector<8x128xf32>
      %cst_10 = arith.constant 0.000000e+00 : f32
      %28 = vector.broadcast %cst_10 : f32 to vector<8x128xf32>
      %29 = arith.subf %28, %27 : vector<8x128xf32>
      %30 = math.exp %29 : vector<8x128xf32>
      %cst_11 = arith.constant 1.000000e+00 : f32
      %31 = vector.broadcast %cst_11 : f32 to vector<8x128xf32>
      %32 = arith.addf %31, %30 : vector<8x128xf32>
      %33 = math.log %32 : vector<8x128xf32>
      %34 = arith.addf %26, %33 : vector<8x128xf32>
      %cst_12 = arith.constant 0.000000e+00 : f32
      %35 = vector.shape_cast %8 : vector<1x128xi1> to vector<1x128xi1>
      %36 = vector.broadcast %35 : vector<1x128xi1> to vector<8x128xi1>
      %37 = vector.broadcast %cst_12 : f32 to vector<8x128xf32>
      %38 = arith.select %36, %34, %37 : vector<8x128xi1>, vector<8x128xf32>
      %39 = vector.shape_cast %38 : vector<8x128xf32> to vector<1x8x128xf32>
      %cst_13 = arith.constant dense<0.000000e+00> : vector<8x128xf32>
      %40 = vector.multi_reduction <add>, %39, %cst_13 [0] : vector<1x8x128xf32> to vector<8x128xf32>
      %c0_14 = arith.constant 0 : index
      %c0_15 = arith.constant 0 : index
      %41 = vector.load %arg2[%c0_14, %c0_15] : memref<8x128xf32, #tpu.memory_space<vmem>>, vector<8x128xf32>
      tpu.vector_store %arg2[%c0_14, %c0_15], %40 {strides = array<i32>} : memref<8x128xf32, #tpu.memory_space<vmem>>, vector<8x128xf32>,
    } else {
    }
    %true = arith.constant true
    %18 = arith.xori %15, %true : i1
    %19 = arith.extui %18 : i1 to i32
    %c0_i32_6 = arith.constant 0 : i32
    %20 = arith.cmpi ne, %19, %c0_i32_6 : i32
    scf.if %20 {
      %21 = tpu.iota {dimensions = array<i32: 0>} : vector<8x128xi32>
      %22 = tpu.iota {dimensions = array<i32: 1>} : vector<8x128xi32>
      %c128_i32 = arith.constant 128 : i32
      %23 = vector.broadcast %c128_i32 : i32 to vector<8x128xi32>
      %24 = arith.muli %21, %23 : vector<8x128xi32>
      %25 = vector.broadcast %0 : i32 to vector<8x128xi32>
      %26 = arith.addi %25, %24 : vector<8x128xi32>
      %27 = arith.addi %26, %22 : vector<8x128xi32>
      %c16_i32_7 = arith.constant 16 : i32
      %28 = vector.broadcast %c16_i32_7 : i32 to vector<8x128xi32>
      %29 = arith.cmpi slt, %27, %28 : vector<8x128xi32>
      %cst = arith.constant 0.000000e+00 : f32
      %30 = vector.broadcast %cst : f32 to vector<8x128xf32>
      %31 = arith.subf %30, %3 : vector<8x128xf32>
      %32 = arith.select %29, %3, %31 : vector<8x128xi1>, vector<8x128xf32>
      %cst_8 = arith.constant 0.000000e+00 : f32
      %33 = vector.broadcast %cst_8 : f32 to vector<8x128xf32>
      %34 = arith.maximumf %32, %33 : vector<8x128xf32>
      %35 = math.absf %32 : vector<8x128xf32>
      %cst_9 = arith.constant 0.000000e+00 : f32
      %36 = vector.broadcast %cst_9 : f32 to vector<8x128xf32>
      %37 = arith.subf %36, %35 : vector<8x128xf32>
      %38 = math.exp %37 : vector<8x128xf32>
      %cst_10 = arith.constant 1.000000e+00 : f32
      %39 = vector.broadcast %cst_10 : f32 to vector<8x128xf32>
      %40 = arith.addf %39, %38 : vector<8x128xf32>
      %41 = math.log %40 : vector<8x128xf32>
      %42 = arith.addf %34, %41 : vector<8x128xf32>
      %c48_i32_11 = arith.constant 48 : i32
      %43 = vector.broadcast %c48_i32_11 : i32 to vector<8x128xi32>
      %44 = arith.cmpi slt, %27, %43 : vector<8x128xi32>
      %45 = vector.broadcast %8 : vector<1x128xi1> to vector<8x128xi1>
      %46 = arith.andi %45, %44 : vector<8x128xi1>
      %cst_12 = arith.constant 0.000000e+00 : f32
      %47 = vector.broadcast %cst_12 : f32 to vector<8x128xf32>
      %48 = arith.select %46, %42, %47 : vector<8x128xi1>, vector<8x128xf32>
      %49 = vector.shape_cast %48 : vector<8x128xf32> to vector<1x8x128xf32>
      %cst_13 = arith.constant dense<0.000000e+00> : vector<8x128xf32>
      %50 = vector.multi_reduction <add>, %49, %cst_13 [0] : vector<1x8x128xf32> to vector<8x128xf32>
      %c0_14 = arith.constant 0 : index
      %c0_15 = arith.constant 0 : index
      %51 = vector.load %arg2[%c0_14, %c0_15] : memref<8x128xf32, #tpu.memory_space<vmem>>, vector<8x128xf32>
      tpu.vector_store %arg2[%c0_14, %c0_15], %50 {strides = array<i32>} : memref<8x128xf32, #tpu.memory_space<vmem>>, vector<8x128xf32>,
    } else {
    }
    return
  }
  func.func @transform_0(%arg0: i32) -> (i32, i32) {
    %c0_i32 = arith.constant 0 : i32
    %c0_i32_0 = arith.constant 0 : i32
    return %arg0, %c0_i32 : i32, i32
  }
  func.func @transform_1(%arg0: i32) -> (i32, i32) {
    %c0_i32 = arith.constant 0 : i32
    %c0_i32_0 = arith.constant 0 : i32
    return %arg0, %c0_i32 : i32, i32
  }
}

</mosaic_0001>

<bundles_post_ra>
// kernel: tpu_custom_call.1
= control target key start
LH: loop header
LB: loop body
LE: loop exit
PB: predicated region body
PF: predicated region fallthrough
CT: control target
= control target key end

     0   :  { %6 = vsyncpa [#allocation3], 0  ;;  %s169_s0 = inlined_call_operand.hbm [shape: f32[8,128], index: 0, kind: input, shape index: {}]   ;;  %s170_s1 = inlined_call_operand.hbm [shape: f32[8,128], index: 1, kind: output, shape index: {}]  }
   0x1   :  { %7 = vsyncpa [#allocation4], 0  ;;  %s150_s6 = smov [#allocation2]  }
   0x2   :  { %s14_s7 = sshll.u32 %s150_s6, 4  ;;  %s15_s7 = int_to_ptr.vmem [resolvable:$true] %s14_s7 }
   0x3   :  { %s114_s8 = scalar_lea.vmem %s15_s7, 128  ;;  %p119_p1 = scmp.lt.s32.totalorder %s15_s7, %s15_s7 }
   0x4   :  { %p115_p0 = scmp.ne.s32.totalorder %s15_s7, %s114_s8  ;;  %p120_p2 = scmp.lt.s32.totalorder %s114_s8, %s114_s8 }
   0x6   :  { %p121_p3 = por %p120_p2, %p119_p1 }
   0x8   :  { %p122_p4 = pnand %p121_p3, %p115_p0 }
   0xa   :  { %125 = shalt.err (!%p122_p4)
}
   0xb   :  { %17 = dma.hbm_to_vmem [thread:$0]  %s169_s0, 128, %s15_s7, [#allocation3]  }
   0xc   :  { %146 = dma.done.wait [#allocation3], 128  }
   0xd   :  { %147 = vsyncadd [#allocation3], 4294967168  ;;  %v22_v0 = vld [vmem:[#allocation2] sm:$0xff]  ;;  %s151_s11 = smov 1   ;;  %v26_v1 = vlaneseq  ;;  %s152_s0 = smov [#allocation5]  }
   0xe   :  { %23 = vrot.lane.b32.xlu0 %v22_v0, %s151_s11  ;;  %s90_s12 = sshll.u32 %s152_s0, 4  ;;  %s91_s12 = int_to_ptr.vmem [resolvable:$true] %s90_s12 }
   0xf   :  { %v60_v2 = vshrl.u32 %v26_v1, 7  ;;  %v27_v3 = vand.u32 127, %v26_v1  ;;  %s126_s13 = scalar_lea.vmem %s91_s12, 128  ;;  %p131_p6 = scmp.lt.s32.totalorder %s91_s12, %s91_s12 }
  0x10   :  { %p127_p5 = scmp.ne.s32.totalorder %s91_s12, %s126_s13  ;;  %p132_p7 = scmp.lt.s32.totalorder %s126_s13, %s126_s13 }
  0x11   :  { %v61_v4 = vmul.u32 128, %v60_v2  ;;  %v28_v15 = vand.u32 1, %v27_v3 }
  0x12   :  { %p133_p8 = por %p132_p7, %p131_p6 }
  0x13   :  { %v64_v5 = vadd.s32 %v61_v4, %v27_v3  ;;  %vm29_vm1 = vcmp.eq.s32.totalorder %v28_v15, 1 }
  0x14   :  { %p134_p9 = pnand %p133_p8, %p127_p5 }
  0x15   :  { %vm65_vm0 = vcmp.lt.s32.totalorder %v64_v5, 16  ;;  %vm77_vm2 = vcmp.lt.s32.totalorder %v64_v5, 48 }
  0x16   :  { %vm80_vm3 = vmand %vm29_vm1, %vm77_vm2 }
  0x80   :  { %v24_v6 = vpop.permute.xlu0 %23 }
  0x81   :  { %v25_v7 = vsub.f32 %v24_v6, %v22_v0 }
  0x83   :  { %v66_v8 = vsub.f32 0.0, %v25_v7 }
  0x85   :  { %v67_v9 = vsel %vm65_vm0, %v25_v7, %v66_v8 }
  0x86   :  { %v69_v10 = vand.u32 2147483647, %v67_v9  ;;  %v68_v17 = vmax.f32 %v67_v9, 0.0 }
  0x88   :  { %v70_v11 = vsub.f32 0.0, %v69_v10 }
  0x8a   :  { %v71_v12 = vmul.f32 1.442695, %v70_v11 }
  0x8c   :  { %102 = vpow2.f32 %v71_v12 }
  0x99   :  { %v103_v13 = vpop.eup %102 }
  0x9a   :  { %v73_v14 = vadd.f32 1.0, %v103_v13 }
  0x9c   :  { %104 = vlog2.f32 %v73_v14 }
  0xa9   :  { %v105_v16 = vpop.eup %104 }
  0xaa   :  { %v75_v18 = vmul.f32 0.6931472, %v105_v16 }
  0xac   :  { %v76_v19 = vadd.f32 %v75_v18, %v68_v17 }
  0xae   :  { %v81_v20 = vsel %vm80_vm3, %v76_v19, 0.0 }
  0xaf   :  { %83 = vst [vmem:[#allocation5] sm:$0xff] %v81_v20 }
  0xb0   :  { %137 = shalt.err (!%p134_p9)
}
  0xb1   :  { %93 = dma.vmem_to_hbm [thread:$0]  %s91_s12, 128, %s170_s1, [#allocation4]  }
  0xb2   :  { %148 = dma.done.wait [#allocation4], 128  }
  0xb3   :  { %149 = vsyncadd [#allocation4], 4294967168 }
  0xb4   :  { %97 = vsyncpa [#allocation3], 1 }
  0xb5   :  { %98 = vsyncpa [#allocation4], 1 }

</bundles_post_ra>
